<compile_context>
chip_gen: v7x
topology: tpu7x:2x2x1
jax: 0.10.0
libtpu: 0.0.40
codegen_flags: <defaults>
</compile_context>

<pallas_src>
import jax
import jax.numpy as jnp
from jax.experimental import pallas as pl
from jax.experimental.pallas import tpu as pltpu


def _project_kernel(x_ref, w1_ref, b1_ref, w2_ref, b2_ref, o_ref):
    # Layer 1: (tb, d_in) @ (d_in, d_out), f32 accumulation on the MXU.
    h = jnp.dot(x_ref[...], w1_ref[...], preferred_element_type=jnp.float32)
    h = h + b1_ref[...]
    # LeakyReLU (negative_slope = 0.01, PyTorch default): single vmax.
    h = jnp.maximum(h, 0.01 * h)
    # Layer 2: (tb, d_out) @ (d_out, d_out) + bias.
    y = jnp.dot(h.astype(w2_ref.dtype), w2_ref[...],
                preferred_element_type=jnp.float32)
    y = y + b2_ref[...]
    o_ref[...] = y.astype(o_ref.dtype)


def _round_up(x, m):
    return ((x + m - 1) // m) * m


def _pad2(a, rows, cols):
    if rows == 0 and cols == 0:
        return a
    return jnp.pad(a, ((0, rows), (0, cols)))


def _vmem_capacity_bytes():
    try:
        cap = getattr(pltpu.get_tpu_info(), "vmem_capacity_bytes", None)
        if cap:
            return int(cap)
    except Exception:
        pass
    return 64 * 1024 * 1024  # conservative fallback (v7x per-TC VMEM)


def project(x, w1, b1, w2, b2, *, block_b=None, mxu_dtype=None):
    """Two-layer MLP projector as a single Pallas kernel.

    x:  (B, dim_in)
    w1: (dim_in, dim_out)   (already transposed vs PyTorch's (out, in))
    b1: (dim_out,)
    w2: (dim_out, dim_out)
    b2: (dim_out,)
    mxu_dtype: optional narrower MXU operand dtype (e.g. jnp.bfloat16);
               accumulation stays f32.  Default keeps the input dtype.
    returns (B, dim_out) in x.dtype
    """
    B, dim_in = x.shape
    dim_out = w1.shape[1]
    out_dtype = x.dtype
    op_dtype = jnp.dtype(mxu_dtype) if mxu_dtype is not None else jnp.dtype(x.dtype)
    op_isz = op_dtype.itemsize
    out_isz = jnp.dtype(out_dtype).itemsize

    # --- generation-aware caps -------------------------------------------
    vmem_cap = _vmem_capacity_bytes()
    big_vmem = vmem_cap > 96 * 1024 * 1024          # v5e / v6e (128 MiB VMEM)
    block_cap = 1024 if big_vmem else 512

    # --- batch tile: >= 2 grid steps whenever B allows (shards across v7x's
    #     two TensorCores and lets the pipeliner overlap DMA with compute),
    #     multiple of 8 sublanes, capped per generation.
    if block_b is None:
        target = pl.cdiv(B, 2) if B >= 16 else B
        block_b = min(_round_up(target, 8), block_cap)
    block_b = max(8, _round_up(block_b, 8))
    B_p = _round_up(B, block_b)

    # --- pad feature axes to 128-lane multiples (exact: zero padding),
    #     skipped when already aligned.  In a real model the four parameter
    #     tensors are padded/cast once at init, not per call.
    d_in_p = _round_up(dim_in, 128)
    d_out_p = _round_up(dim_out, 128)

    x_p = _pad2(x.astype(op_dtype), B_p - B, d_in_p - dim_in)
    w1_p = _pad2(w1.astype(op_dtype), d_in_p - dim_in, d_out_p - dim_out)
    w2_p = _pad2(w2.astype(op_dtype), d_out_p - dim_out, d_out_p - dim_out)
    b1_p = _pad2(b1.reshape(1, dim_out).astype(jnp.float32), 0, d_out_p - dim_out)
    b2_p = _pad2(b2.reshape(1, dim_out).astype(jnp.float32), 0, d_out_p - dim_out)

    grid = (B_p // block_b,)

    # --- VMEM budget: weights/biases single-buffered (Buffered(1), constant
    #     index_map) + double-buffered x/out tiles + f32 intermediates.
    footprint = (
        (d_in_p * d_out_p + d_out_p * d_out_p) * op_isz   # W1, W2 (1 buffer)
        + 2 * d_out_p * 4                                  # b1, b2 (f32)
        + 2 * block_b * d_in_p * op_isz                    # x tile, 2 buffers
        + 2 * block_b * d_out_p * out_isz                  # out tile, 2 buffers
        + 2 * block_b * d_out_p * 4                        # f32 h / y temporaries
    )
    headroom = 8 * 1024 * 1024
    vmem_limit = int(min(max(2 * footprint, 16 * 1024 * 1024),
                         max(vmem_cap - headroom, 32 * 1024 * 1024)))

    flops = 2 * B_p * (d_in_p * d_out_p + d_out_p * d_out_p)
    bytes_accessed = (
        x_p.size * op_isz
        + (w1_p.size + w2_p.size) * op_isz
        + (b1_p.size + b2_p.size) * 4
        + B_p * d_out_p * out_isz
    )

    resident = dict(pipeline_mode=pl.Buffered(1))   # constant-index blocks

    out_p = pl.pallas_call(
        _project_kernel,
        out_shape=jax.ShapeDtypeStruct((B_p, d_out_p), out_dtype),
        grid_spec=pltpu.PrefetchScalarGridSpec(
            num_scalar_prefetch=0,
            grid=grid,
            in_specs=[
                pl.BlockSpec((block_b, d_in_p), lambda i: (i, 0)),              # x tile
                pl.BlockSpec((d_in_p, d_out_p), lambda i: (0, 0), **resident),  # W1
                pl.BlockSpec((1, d_out_p), lambda i: (0, 0), **resident),       # b1
                pl.BlockSpec((d_out_p, d_out_p), lambda i: (0, 0), **resident), # W2
                pl.BlockSpec((1, d_out_p), lambda i: (0, 0), **resident),       # b2
            ],
            out_specs=pl.BlockSpec((block_b, d_out_p), lambda i: (i, 0)),
        ),
        compiler_params=pltpu.CompilerParams(
            dimension_semantics=("parallel",),
            vmem_limit_bytes=vmem_limit,
        ),
        cost_estimate=pl.CostEstimate(
            flops=flops, transcendentals=0, bytes_accessed=bytes_accessed),
    )(x_p, w1_p, b1_p, w2_p, b2_p)

    return out_p[:B, :dim_out]


def _init_linear_params(key, fan_in, fan_out, dtype=jnp.float32):
    """Init mimicking torch.nn.Linear defaults:
    kaiming_uniform_(a=sqrt(5)) -> bound = 1/sqrt(fan_in) for both W and b."""
    kw, kb = jax.random.split(key)
    bound = 1.0 / jnp.sqrt(fan_in)
    w = jax.random.uniform(kw, (fan_in, fan_out), dtype, -bound, bound)
    b = jax.random.uniform(kb, (fan_out,), dtype, -bound, bound)
    return w, b


def project_ref(x, w1, b1, w2, b2):
    h = x @ w1 + b1
    h = jnp.where(h > 0, h, 0.01 * h)
    return h @ w2 + b2


if __name__ == "__main__":
    key = jax.random.PRNGKey(0)

    # --- case 1: shapes implied by the module's tiny test (B=8, 32 -> 32) ---
    k_x, k_l1, k_l2 = jax.random.split(key, 3)
    B, dim_in, dim_out = 8, 32, 32
    x = jax.random.normal(k_x, (B, dim_in), jnp.float32)
    w1, b1 = _init_linear_params(k_l1, dim_in, dim_out)
    w2, b2 = _init_linear_params(k_l2, dim_out, dim_out)

    out = jax.block_until_ready(project(x, w1, b1, w2, b2))
    ref = project_ref(x, w1, b1, w2, b2)
    assert out.shape == (B, dim_out)
    assert jnp.allclose(out, ref, atol=1e-5, rtol=1e-5), "mismatch (case 1)"

    # --- case 2: non-aligned dims + multi-tile batch grid (exercises feature
    #     + batch padding and the pipelined / parallel batch axis) ---
    k_x2, k_l3, k_l4 = jax.random.split(jax.random.PRNGKey(1), 3)
    B2, din2, dout2 = 80, 96, 160
    x2 = jax.random.normal(k_x2, (B2, din2), jnp.float32)
    w1b, b1b = _init_linear_params(k_l3, din2, dout2)
    w2b, b2b = _init_linear_params(k_l4, dout2, dout2)

    out2 = jax.block_until_ready(project(x2, w1b, b1b, w2b, b2b, block_b=32))
    ref2 = project_ref(x2, w1b, b1b, w2b, b2b)
    assert out2.shape == (B2, dout2)
    assert jnp.allclose(out2, ref2, atol=1e-4, rtol=1e-4), "mismatch (case 2)"

    # --- case 3: bf16 MXU operands with f32 accumulation (loose check) ---
    out3 = jax.block_until_ready(
        project(x2, w1b, b1b, w2b, b2b, mxu_dtype=jnp.bfloat16))
    assert out3.shape == (B2, dout2)
    assert bool(jnp.all(jnp.isfinite(out3)))
    assert float(jnp.max(jnp.abs(out3 - ref2))) < 0.25, "mismatch (case 3, bf16)"

    print("KERNEL_OK")
</pallas_src>

<mosaic_0001>
module attributes {stable_mosaic.version = 11 : i64} {
  func.func @_project_kernel(%arg0: i32, %arg1: memref<8x128xf32, #tpu.memory_space<vmem>>, %arg2: memref<128x128xf32, #tpu.memory_space<vmem>>, %arg3: memref<1x128xf32, #tpu.memory_space<vmem>>, %arg4: memref<128x128xf32, #tpu.memory_space<vmem>>, %arg5: memref<1x128xf32, #tpu.memory_space<vmem>>, %arg6: memref<8x128xf32, #tpu.memory_space<vmem>>) attributes {dimension_semantics = [#tpu.dimension_semantics<parallel>], iteration_bounds = array<i64: 1>, scalar_prefetch = 0 : i64, scratch_operands = 0 : i64, tpu.core_type = #tpu.core_type<tc>, window_params = [{transform_indices = @transform_0, window_bounds = array<i64: 8, 128>}, {pipeline_mode = #tpu.pipeline_mode<synchronous>, transform_indices = @transform_1, window_bounds = array<i64: 128, 128>}, {pipeline_mode = #tpu.pipeline_mode<synchronous>, transform_indices = @transform_2, window_bounds = array<i64: 1, 128>}, {pipeline_mode = #tpu.pipeline_mode<synchronous>, transform_indices = @transform_3, window_bounds = array<i64: 128, 128>}, {pipeline_mode = #tpu.pipeline_mode<synchronous>, transform_indices = @transform_4, window_bounds = array<i64: 1, 128>}, {transform_indices = @transform_5, window_bounds = array<i64: 8, 128>}]} {
    %c0 = arith.constant 0 : index
    %c0_0 = arith.constant 0 : index
    %0 = vector.load %arg1[%c0, %c0_0] : memref<8x128xf32, #tpu.memory_space<vmem>>, vector<8x128xf32>
    %c0_1 = arith.constant 0 : index
    %c0_2 = arith.constant 0 : index
    %1 = vector.load %arg2[%c0_1, %c0_2] : memref<128x128xf32, #tpu.memory_space<vmem>>, vector<128x128xf32>
    %cst = arith.constant dense<0.000000e+00> : vector<8x128xf32>
    %2 = tpu.matmul %0, %1, %cst {dimension_numbers = #tpu.dot_dimension_numbers<[1], [0], [0], [1], [0, 0, 1, 1], [], []>} : vector<8x128xf32>, vector<128x128xf32>, vector<8x128xf32> -> vector<8x128xf32>
    %c0_3 = arith.constant 0 : index
    %c0_4 = arith.constant 0 : index
    %3 = vector.load %arg3[%c0_3, %c0_4] : memref<1x128xf32, #tpu.memory_space<vmem>>, vector<1x128xf32>
    %4 = vector.broadcast %3 : vector<1x128xf32> to vector<8x128xf32>
    %5 = arith.addf %2, %4 : vector<8x128xf32>
    %cst_5 = arith.constant 0.00999999977 : f32
    %6 = vector.broadcast %cst_5 : f32 to vector<8x128xf32>
    %7 = arith.mulf %6, %5 : vector<8x128xf32>
    %8 = arith.maximumf %5, %7 : vector<8x128xf32>
    %c0_6 = arith.constant 0 : index
    %c0_7 = arith.constant 0 : index
    %9 = vector.load %arg4[%c0_6, %c0_7] : memref<128x128xf32, #tpu.memory_space<vmem>>, vector<128x128xf32>
    %cst_8 = arith.constant dense<0.000000e+00> : vector<8x128xf32>
    %10 = tpu.matmul %8, %9, %cst_8 {dimension_numbers = #tpu.dot_dimension_numbers<[1], [0], [0], [1], [0, 0, 1, 1], [], []>} : vector<8x128xf32>, vector<128x128xf32>, vector<8x128xf32> -> vector<8x128xf32>
    %c0_9 = arith.constant 0 : index
    %c0_10 = arith.constant 0 : index
    %11 = vector.load %arg5[%c0_9, %c0_10] : memref<1x128xf32, #tpu.memory_space<vmem>>, vector<1x128xf32>
    %12 = vector.broadcast %11 : vector<1x128xf32> to vector<8x128xf32>
    %13 = arith.addf %10, %12 : vector<8x128xf32>
    %c0_11 = arith.constant 0 : index
    %c0_12 = arith.constant 0 : index
    %14 = vector.load %arg6[%c0_11, %c0_12] : memref<8x128xf32, #tpu.memory_space<vmem>>, vector<8x128xf32>
    tpu.vector_store %arg6[%c0_11, %c0_12], %13 {strides = array<i32>} : memref<8x128xf32, #tpu.memory_space<vmem>>, vector<8x128xf32>,
    return
  }
  func.func @transform_0(%arg0: i32) -> (i32, i32) {
    %c0_i32 = arith.constant 0 : i32
    %c0_i32_0 = arith.constant 0 : i32
    return %arg0, %c0_i32 : i32, i32
  }
  func.func @transform_1(%arg0: i32) -> (i32, i32) {
    %c0_i32 = arith.constant 0 : i32
    %c0_i32_0 = arith.constant 0 : i32
    %c0_i32_1 = arith.constant 0 : i32
    return %c0_i32, %c0_i32_0 : i32, i32
  }
  func.func @transform_2(%arg0: i32) -> (i32, i32) {
    %c0_i32 = arith.constant 0 : i32
    %c0_i32_0 = arith.constant 0 : i32
    %c0_i32_1 = arith.constant 0 : i32
    return %c0_i32, %c0_i32_0 : i32, i32
  }
  func.func @transform_3(%arg0: i32) -> (i32, i32) {
    %c0_i32 = arith.constant 0 : i32
    %c0_i32_0 = arith.constant 0 : i32
    %c0_i32_1 = arith.constant 0 : i32
    return %c0_i32, %c0_i32_0 : i32, i32
  }
  func.func @transform_4(%arg0: i32) -> (i32, i32) {
    %c0_i32 = arith.constant 0 : i32
    %c0_i32_0 = arith.constant 0 : i32
    %c0_i32_1 = arith.constant 0 : i32
    return %c0_i32, %c0_i32_0 : i32, i32
  }
  func.func @transform_5(%arg0: i32) -> (i32, i32) {
    %c0_i32 = arith.constant 0 : i32
    %c0_i32_0 = arith.constant 0 : i32
    return %arg0, %c0_i32 : i32, i32
  }
}

</mosaic_0001>

<bundles_post_ra>
// kernel: tpu_custom_call.1
= control target key start
LH: loop header
LB: loop body
LE: loop exit
PB: predicated region body
PF: predicated region fallthrough
CT: control target
= control target key end

     0   :  { %10 = vsyncpa [#allocation3], 0  ;;  %s638_s0 = inlined_call_operand.hbm [shape: f32[8,128], index: 0, kind: input, shape index: {}]   ;;  %s639_s1 = inlined_call_operand.hbm [shape: f32[128,128], index: 1, kind: input, shape index: {}]   ;;  %s640_s2 = inlined_call_operand.vmem [shape: f32[1,128], index: 2, kind: input, shape index: {}]   ;;  %s641_s3 = inlined_call_operand.hbm [shape: f32[128,128], index: 3, kind: input, shape index: {}]   ;;  %s642_s4 = inlined_call_operand.vmem [shape: f32[1,128], index: 4, kind: input, shape index: {}]   ;;  %s643_s5 = inlined_call_operand.hbm [shape: f32[8,128], index: 5, kind: output, shape index: {}]  }
   0x1   :  { %11 = vsyncpa [#allocation6], 0 }
   0x2   :  { %12 = vsyncpa [#allocation4], 0  ;;  %s523_s18 = smov [#allocation5]   ;;  %s429_s22 = scalar_lea.hbm %s639_s1, 2048 }
   0x3   :  { %s28_s19 = sshll.u32 %s523_s18, 4  ;;  %p430_p0 = scmp.ne.s32.totalorder %s639_s1, %s429_s22  ;;  %s29_s19 = int_to_ptr.vmem [resolvable:$true] %s28_s19 }
   0x4   :  { %p433_p1 = scmp.lt.u32.totalorder %s429_s22, %s639_s1 }
   0x6   :  { %p435_p2 = pnand %p433_p1, %p430_p0 }
   0x8   :  { %438 = shalt.err (!%p435_p2)
}
   0x9   :  { %s439_s27 = scalar_lea.vmem %s29_s19, 2048  ;;  %p444_p4 = scmp.lt.s32.totalorder %s29_s19, %s29_s19 }
   0xa   :  { %p440_p3 = scmp.ne.s32.totalorder %s29_s19, %s439_s27  ;;  %p445_p5 = scmp.lt.s32.totalorder %s439_s27, %s439_s27 }
   0xc   :  { %p446_p6 = por %p445_p5, %p444_p4 }
   0xe   :  { %p447_p7 = pnand %p446_p6, %p440_p3 }
  0x10   :  { %450 = shalt.err (!%p447_p7)
}
  0x11   :  { %s524_s28 = smov 128   ;;  %s525_s29 = smov 8  }
  0x12   :  { %34 = dma.hbm_to_vmem [thread:$0]  %s639_s1, 2048, %s29_s19, [#allocation6], %s524_s28, %s524_s28, %s525_s29  }
  0x13   :  { %s526_s7 = smov [#allocation2]   ;;  %s527_s9 = smov [#allocation7]  }
  0x14   :  { %s19_s8 = sshll.u32 %s526_s7, 4  ;;  %s42_s10 = sshll.u32 %s527_s9, 4  ;;  %s20_s8 = int_to_ptr.vmem [resolvable:$true] %s19_s8  ;;  %s43_s10 = int_to_ptr.vmem [resolvable:$true] %s42_s10 }
  0x15   :  { %s451_s13 = scalar_lea.hbm %s638_s0, 128 }
  0x16   :  { %p452_p8 = scmp.ne.s32.totalorder %s638_s0, %s451_s13  ;;  %p455_p9 = scmp.lt.u32.totalorder %s451_s13, %s638_s0 }
  0x18   :  { %p457_p10 = pnand %p455_p9, %p452_p8 }
  0x1a   :  { %460 = shalt.err (!%p457_p10)
}
  0x1b   :  { %s461_s1 = scalar_lea.vmem %s20_s8, 128  ;;  %p466_p12 = scmp.lt.s32.totalorder %s20_s8, %s20_s8 }
  0x1c   :  { %p462_p11 = scmp.ne.s32.totalorder %s20_s8, %s461_s1  ;;  %p467_p13 = scmp.lt.s32.totalorder %s461_s1, %s461_s1 }
  0x1e   :  { %p468_p0 = por %p467_p13, %p466_p12 }
  0x20   :  { %p469_p1 = pnand %p468_p0, %p462_p11 }
  0x22   :  { %472 = shalt.err (!%p469_p1)
}
  0x23   :  { %22 = dma.hbm_to_vmem [thread:$0]  %s638_s0, 128, %s20_s8, [#allocation3]  }
  0x24   :  { %s473_s22 = scalar_lea.hbm %s641_s3, 2048 }
  0x25   :  { %p474_p2 = scmp.ne.s32.totalorder %s641_s3, %s473_s22  ;;  %p477_p3 = scmp.lt.u32.totalorder %s473_s22, %s641_s3 }
  0x27   :  { %p479_p4 = pnand %p477_p3, %p474_p2 }
  0x29   :  { %482 = shalt.err (!%p479_p4)
}
  0x2a   :  { %s483_s27 = scalar_lea.vmem %s43_s10, 2048  ;;  %p488_p6 = scmp.lt.s32.totalorder %s43_s10, %s43_s10 }
  0x2b   :  { %p484_p5 = scmp.ne.s32.totalorder %s43_s10, %s483_s27  ;;  %p489_p7 = scmp.lt.s32.totalorder %s483_s27, %s483_s27 }
  0x2d   :  { %p490_p8 = por %p489_p7, %p488_p6 }
  0x2f   :  { %p491_p9 = pnand %p490_p8, %p484_p5 }
  0x31   :  { %494 = shalt.err (!%p491_p9)
}
  0x32   :  { %48 = dma.hbm_to_vmem [thread:$0]  %s641_s3, 2048, %s43_s10, [#allocation6], %s524_s28, %s524_s28, %s525_s29  }
  0x33   :  { %517 = dma.done.wait [#allocation3], 128  }
  0x34   :  { %518 = vsyncadd [#allocation3], 4294967168 }
  0x35   :  { %519 = dma.done.wait [#allocation6], 4096  }
  0x36   :  { %520 = vsyncadd [#allocation6], 4294963200  ;;  %v528_v0 = vmov 0.0|0.0   ;;  %vm529_vm0 = vmmov 0   ;;  %v530_v1 = vmov 0.0   ;;  %v61_v2 = vld [vmem:[#allocation5] sm:$0xff] }
  0x37   :  { %372 = vmatprep.subr.bf16.mxu0 %v528_v0  ;;  %334 = vmatprep.mubr.msk.f32.mxu0 %vm529_vm0, %v530_v1  ;;  %v62_v3 = vld [vmem:[#allocation5 + $0x8] sm:$0xff]  ;;  %v63_v4 = vld [vmem:[#allocation5 + $0x10] sm:$0xff]  ;;  %v64_v6 = vld [vmem:[#allocation5 + $0x18] sm:$0xff]  ;;  %s531_s7 = smov [#allocation8]  }
  0x38   :  { %396 = vmatprep.subr.bf16.mxu1 %v528_v0  ;;  %369 = vmatprep.mubr.msk.f32.mxu1 %vm529_vm0, %v530_v1  ;;  %v373_v5 = vpack.c.bf16 %v62_v3, %v61_v2  ;;  %v376_v7 = vpack.c.bf16 %v64_v6, %v63_v4  ;;  %v65_v8 = vld [vmem:[#allocation5 + $0x20] sm:$0xff]  ;;  %v66_v9 = vld [vmem:[#allocation5 + $0x28] sm:$0xff]  ;;  %v158_v12 = vld [vmem:[#allocation7 + $0x10] sm:$0xff]  ;;  %s256_s8 = sshll.u32 %s531_s7, 4  ;;  %s257_s8 = int_to_ptr.vmem [resolvable:$true] %s256_s8 }
  0x39   :  { %v156_v10 = vld [vmem:[#allocation7] sm:$0xff]  ;;  %v157_v11 = vld [vmem:[#allocation7 + $0x8] sm:$0xff]  ;;  %v159_v13 = vld [vmem:[#allocation7 + $0x18] sm:$0xff]  ;;  %v379_v14 = vpack.c.bf16 %v66_v9, %v65_v8  ;;  %s495_s9 = scalar_lea.vmem %s257_s8, 128  ;;  %p500_p11 = scmp.lt.s32.totalorder %s257_s8, %s257_s8 }
  0x3a   :  { %374 = vmatpush3.bf16.msra.mxu0 %v373_v5  ;;  %v397_v15 = vpack.c.bf16 %v157_v11, %v156_v10  ;;  %v67_v16 = vld [vmem:[#allocation5 + $0x30] sm:$0xff]  ;;  %v68_v17 = vld [vmem:[#allocation5 + $0x38] sm:$0xff]  ;;  %v400_v18 = vpack.c.bf16 %v159_v13, %v158_v12  ;;  %v160_v19 = vld [vmem:[#allocation7 + $0x20] sm:$0xff]  ;;  %p496_p10 = scmp.ne.s32.totalorder %s257_s8, %s495_s9  ;;  %p501_p12 = scmp.lt.s32.totalorder %s495_s9, %s495_s9 }
  0x3b   :  { %375 = vmatprep.subr.bf16.mxu0 %v528_v0  ;;  %v161_v20 = vld [vmem:[#allocation7 + $0x28] sm:$0xff]  ;;  %v382_v21 = vpack.c.bf16 %v68_v17, %v67_v16  ;;  %v69_v22 = vld [vmem:[#allocation5 + $0x40] sm:$0xff]  ;;  %v162_v25 = vld [vmem:[#allocation7 + $0x30] sm:$0xff] }
  0x3c   :  { %398 = vmatpush3.bf16.msra.mxu1 %v397_v15  ;;  %v70_v23 = vld [vmem:[#allocation5 + $0x48] sm:$0xff]  ;;  %v403_v24 = vpack.c.bf16 %v161_v20, %v160_v19  ;;  %v163_v26 = vld [vmem:[#allocation7 + $0x38] sm:$0xff]  ;;  %v71_v28 = vld [vmem:[#allocation5 + $0x50] sm:$0xff]  ;;  %p502_p13 = por %p501_p12, %p500_p11 }
  0x3d   :  { %399 = vmatprep.subr.bf16.mxu1 %v528_v0  ;;  %v385_v27 = vpack.c.bf16 %v70_v23, %v69_v22  ;;  %v72_v29 = vld [vmem:[#allocation5 + $0x58] sm:$0xff]  ;;  %v406_v30 = vpack.c.bf16 %v163_v26, %v162_v25  ;;  %v164_v31 = vld [vmem:[#allocation7 + $0x40] sm:$0xff]  ;;  %v165_v32 = vld [vmem:[#allocation7 + $0x48] sm:$0xff] }
  0x3e   :  { %377 = vmatpush3.bf16.msra.mxu0 %v376_v7  ;;  %v388_v33 = vpack.c.bf16 %v72_v29, %v71_v28  ;;  %v73_v34 = vld [vmem:[#allocation5 + $0x60] sm:$0xff]  ;;  %v74_v35 = vld [vmem:[#allocation5 + $0x68] sm:$0xff]  ;;  %v409_v36 = vpack.c.bf16 %v165_v32, %v164_v31  ;;  %v166_v37 = vld [vmem:[#allocation7 + $0x50] sm:$0xff]  ;;  %p503_p0 = pnand %p502_p13, %p496_p10 }
  0x3f   :  { %378 = vmatprep.subr.bf16.mxu0 %v528_v0  ;;  %v167_v38 = vld [vmem:[#allocation7 + $0x58] sm:$0xff]  ;;  %v391_v39 = vpack.c.bf16 %v74_v35, %v73_v34  ;;  %v75_v40 = vld [vmem:[#allocation5 + $0x70] sm:$0xff]  ;;  %v168_v45 = vld [vmem:[#allocation7 + $0x60] sm:$0xff] }
  0x40   :  { %401 = vmatpush3.bf16.msra.mxu1 %v400_v18  ;;  %v76_v41 = vld [vmem:[#allocation5 + $0x78] sm:$0xff]  ;;  %v412_v42 = vpack.c.bf16 %v167_v38, %v166_v37  ;;  %v169_v46 = vld [vmem:[#allocation7 + $0x68] sm:$0xff]  ;;  %v170_v48 = vld [vmem:[#allocation7 + $0x70] sm:$0xff] }
  0x41   :  { %402 = vmatprep.subr.bf16.mxu1 %v528_v0  ;;  %v394_v43 = vpack.c.bf16 %v76_v41, %v75_v40  ;;  %v60_v44 = vld [vmem:[#allocation2] sm:$0xff]  ;;  %v415_v47 = vpack.c.bf16 %v169_v46, %v168_v45 }
  0x42   :  { %380 = vmatpush3.bf16.msra.mxu0 %v379_v14  ;;  %v171_v49 = vld [vmem:[#allocation7 + $0x78] sm:$0xff] }
  0x43   :  { %381 = vmatprep.subr.bf16.mxu0 %v528_v0  ;;  %v418_v50 = vpack.c.bf16 %v171_v49, %v170_v48  ;;  %v266_v51 = vld [vmem:[%s640_s2] ss:$0 sm:$0xff] }
  0x44   :  { %404 = vmatpush3.bf16.msra.mxu1 %v403_v24  ;;  %v267_v57 = vld [vmem:[%s642_s4] ss:$0 sm:$0xff] }
  0x45   :  { %405 = vmatprep.subr.bf16.mxu1 %v528_v0 }
  0x46   :  { %383 = vmatpush3.bf16.msra.mxu0 %v382_v21 }
  0x47   :  { %384 = vmatprep.subr.bf16.mxu0 %v528_v0 }
  0x48   :  { %407 = vmatpush3.bf16.msra.mxu1 %v406_v30 }
  0x49   :  { %408 = vmatprep.subr.bf16.mxu1 %v528_v0 }
  0x4a   :  { %386 = vmatpush3.bf16.msra.mxu0 %v385_v27 }
  0x4b   :  { %387 = vmatprep.subr.bf16.mxu0 %v528_v0 }
  0x4c   :  { %410 = vmatpush3.bf16.msra.mxu1 %v409_v36 }
  0x4d   :  { %411 = vmatprep.subr.bf16.mxu1 %v528_v0 }
  0x4e   :  { %389 = vmatpush3.bf16.msra.mxu0 %v388_v33 }
  0x4f   :  { %390 = vmatprep.subr.bf16.mxu0 %v528_v0 }
  0x50   :  { %413 = vmatpush3.bf16.msra.mxu1 %v412_v42 }
  0x51   :  { %414 = vmatprep.subr.bf16.mxu1 %v528_v0 }
  0x52   :  { %392 = vmatpush3.bf16.msra.mxu0 %v391_v39 }
  0x53   :  { %393 = vmatprep.subr.bf16.mxu0 %v528_v0 }
  0x54   :  { %416 = vmatpush3.bf16.msra.mxu1 %v415_v47 }
  0x55   :  { %417 = vmatprep.subr.bf16.mxu1 %v528_v0 }
  0x56   :  { %395 = vmatpush3.bf16.msra.mxu0 %v394_v43 }
  0x58   :  { %419 = vmatpush3.bf16.msra.mxu1 %v418_v50 }
  0x59   :  { %335 = vmatmul.mubr.f32.vlgmr.msra.gmra.mrb[0].mxu0 %v60_v44 }
 0x12c   :  { %v150_v52 = vpop.f32.mrb[0].mxu0 }
 0x12d   :  { %v151_v53 = vadd.f32 %v266_v51, %v150_v52  ;;  %v336_v54 = vpop.f32.mrb[1].mxu0 }
 0x12f   :  { %v154_v55 = vmul.f32 0.01, %v151_v53 }
 0x131   :  { %v155_v56 = vmax.f32 %v151_v53, %v154_v55 }
 0x133   :  { %370 = vmatmul.mubr.f32.vlgmr.msra.gmra.mrb[0].mxu1 %v155_v56 }
 0x206   :  { %v245_v58 = vpop.f32.mrb[0].mxu1 }
 0x207   :  { %v246_v59 = vadd.f32 %v267_v57, %v245_v58  ;;  %v371_v60 = vpop.f32.mrb[1].mxu1 }
 0x209   :  { %249 = vst [vmem:[#allocation8] sm:$0xff] %v246_v59 }
 0x20a   :  { %506 = shalt.err (!%p503_p0)
}
 0x20b   :  { %s507_s11 = scalar_lea.hbm %s643_s5, 128 }
 0x20c   :  { %p508_p1 = scmp.ne.s32.totalorder %s643_s5, %s507_s11  ;;  %p511_p2 = scmp.lt.u32.totalorder %s507_s11, %s643_s5 }
 0x20e   :  { %p513_p3 = pnand %p511_p2, %p508_p1 }
 0x210   :  { %516 = shalt.err (!%p513_p3)
}
 0x211   :  { %259 = dma.vmem_to_hbm [thread:$0]  %s257_s8, 128, %s643_s5, [#allocation4]  }
 0x212   :  { %521 = dma.done.wait [#allocation4], 128  }
 0x213   :  { %522 = vsyncadd [#allocation4], 4294967168 }
 0x214   :  { %263 = vsyncpa [#allocation3], 1 }
 0x215   :  { %264 = vsyncpa [#allocation6], 1 }
 0x216   :  { %265 = vsyncpa [#allocation4], 1 }

</bundles_post_ra>
